<compile_context>
chip_gen: v6e
topology: v6e:2x2x1
jax: 0.10.0
libtpu: 0.0.40
codegen_flags: <defaults>
</compile_context>

<pallas_src>
import functools

import jax
import jax.numpy as jnp
from jax.experimental import pallas as pl
from jax.experimental.pallas import tpu as pltpu


_VMEM_TILE_BUDGET_BYTES = 16 * 1024 * 1024   # budget for double-buffered row tiles
_MAX_BLOCK_ROWS = 2048
_VMEM_LIMIT_BYTES = 48 * 1024 * 1024         # safe on v5e / v6e / v7x


def _pick_block_rows(rows, per_row_bytes, dtype):
    """Biggest row tile fitting the VMEM budget; dtype-aware sublane multiple."""
    itemsize = jnp.dtype(dtype).itemsize
    sublane = {4: 8, 2: 16, 1: 32}.get(itemsize, 8)
    tm = _VMEM_TILE_BUDGET_BYTES // max(per_row_bytes, 1)
    tm = min(tm, _MAX_BLOCK_ROWS)
    tm = max((tm // sublane) * sublane, sublane)
    rows_rounded = ((rows + sublane - 1) // sublane) * sublane
    tm = min(tm, rows_rounded)
    # Keep >= 2 grid steps when there is enough work (v7x: 2 TensorCores).
    if rows_rounded > sublane and pl.cdiv(rows, tm) < 2:
        half = -(-(rows_rounded // 2) // sublane) * sublane
        tm = max(half, sublane)
    return tm


def _layernorm_f32(z, alpha, bias, eps, features):
    """One-pass unbiased-variance LayerNorm on an f32 (TM, H) tile."""
    n = jnp.float32(features)
    s1 = jnp.sum(z, axis=-1, keepdims=True)
    s2 = jnp.sum(z * z, axis=-1, keepdims=True)
    mean = s1 / n
    # Unbiased variance (N-1), matching torch.var() default.
    var = (s2 - n * mean * mean) / jnp.float32(features - 1)
    inv_std = jax.lax.rsqrt(var + jnp.float32(eps))
    return (z - mean) * inv_std * alpha + bias


# --------------------------------------------------------------------------- #
# Kernel 1: standalone LayerNormalization                                      #
# --------------------------------------------------------------------------- #
def _layernorm_kernel(x_ref, alpha_ref, bias_ref, o_ref, *, eps, features):
    x = x_ref[...].astype(jnp.float32)
    out = _layernorm_f32(x, alpha_ref[...], bias_ref[...], eps, features)
    o_ref[...] = out.astype(o_ref.dtype)


def layer_normalization(x, alpha, bias, eps=1e-3, block_rows=None):
    """LayerNormalization forward. x: (..., H); alpha, bias: (H,)."""
    orig_shape = x.shape
    features = orig_shape[-1]
    rows = 1
    for d in orig_shape[:-1]:
        rows *= d

    x2d = x.reshape(rows, features)
    alpha2d = alpha.reshape(1, features).astype(jnp.float32)
    bias2d = bias.reshape(1, features).astype(jnp.float32)

    itemsize = jnp.dtype(x.dtype).itemsize
    per_row_bytes = 4 * features * itemsize        # 2 in bufs + 2 out bufs
    tm = block_rows if block_rows is not None else _pick_block_rows(
        rows, per_row_bytes, x.dtype)
    grid = (pl.cdiv(rows, tm),)

    kernel = functools.partial(_layernorm_kernel, eps=eps, features=features)

    out2d = pl.pallas_call(
        kernel,
        out_shape=jax.ShapeDtypeStruct((rows, features), x.dtype),
        grid_spec=pltpu.PrefetchScalarGridSpec(
            num_scalar_prefetch=0,
            grid=grid,
            in_specs=[
                pl.BlockSpec((tm, features), lambda i: (i, 0)),
                pl.BlockSpec((1, features), lambda i: (0, 0)),
                pl.BlockSpec((1, features), lambda i: (0, 0)),
            ],
            out_specs=pl.BlockSpec((tm, features), lambda i: (i, 0)),
        ),
        compiler_params=pltpu.CompilerParams(
            dimension_semantics=("parallel",),
            vmem_limit_bytes=_VMEM_LIMIT_BYTES,
        ),
    )(x2d, alpha2d, bias2d)

    return out2d.reshape(orig_shape)


# --------------------------------------------------------------------------- #
# Kernel 2: fused FeedForward -> residual add -> LayerNorm                     #
# (DecoderBlock.residual_connections[1] applied to feed_forward_block, eval)   #
# --------------------------------------------------------------------------- #
def _ffn_residual_ln_kernel(x_ref, w1_ref, b1_ref, w2_ref, b2_ref,
                            alpha_ref, bias_ref, o_ref, *, eps, features):
    x = x_ref[...].astype(jnp.float32)
    h = jnp.dot(x, w1_ref[...], preferred_element_type=jnp.float32) + b1_ref[...]
    h = jnp.maximum(h, jnp.float32(0.0))
    y = jnp.dot(h, w2_ref[...], preferred_element_type=jnp.float32) + b2_ref[...]
    z = y + x                       # dropout == identity (eval mode)
    out = _layernorm_f32(z, alpha_ref[...], bias_ref[...], eps, features)
    o_ref[...] = out.astype(o_ref.dtype)


def ffn_residual_layernorm(x, w1, b1, w2, b2, alpha, bias, eps=1e-3,
                           block_rows=None):
    """layernorm(linear2(relu(linear1(x))) + x).  x: (..., d_model).

    w1: (d_model, d_ff), b1: (d_ff,), w2: (d_ff, d_model), b2: (d_model,)
    (w1 / w2 are the transposes of the torch nn.Linear weight layout).
    """
    orig_shape = x.shape
    d_model = orig_shape[-1]
    d_ff = w1.shape[-1]
    rows = 1
    for d in orig_shape[:-1]:
        rows *= d

    x2d = x.reshape(rows, d_model)
    w1f = w1.astype(jnp.float32)
    b1f = b1.reshape(1, d_ff).astype(jnp.float32)
    w2f = w2.astype(jnp.float32)
    b2f = b2.reshape(1, d_model).astype(jnp.float32)
    alpha2d = alpha.reshape(1, d_model).astype(jnp.float32)
    bias2d = bias.reshape(1, d_model).astype(jnp.float32)

    itemsize = jnp.dtype(x.dtype).itemsize
    # 2 in bufs + 2 out bufs of x-shaped rows, plus f32 intermediates (h, z).
    per_row_bytes = 4 * d_model * itemsize + 4 * (d_ff + 2 * d_model)
    tm = block_rows if block_rows is not None else _pick_block_rows(
        rows, per_row_bytes, x.dtype)
    grid = (pl.cdiv(rows, tm),)

    kernel = functools.partial(_ffn_residual_ln_kernel, eps=eps,
                               features=d_model)

    out2d = pl.pallas_call(
        kernel,
        out_shape=jax.ShapeDtypeStruct((rows, d_model), x.dtype),
        grid_spec=pltpu.PrefetchScalarGridSpec(
            num_scalar_prefetch=0,
            grid=grid,
            in_specs=[
                pl.BlockSpec((tm, d_model), lambda i: (i, 0)),
                pl.BlockSpec((d_model, d_ff), lambda i: (0, 0)),
                pl.BlockSpec((1, d_ff), lambda i: (0, 0)),
                pl.BlockSpec((d_ff, d_model), lambda i: (0, 0)),
                pl.BlockSpec((1, d_model), lambda i: (0, 0)),
                pl.BlockSpec((1, d_model), lambda i: (0, 0)),
                pl.BlockSpec((1, d_model), lambda i: (0, 0)),
            ],
            out_specs=pl.BlockSpec((tm, d_model), lambda i: (i, 0)),
        ),
        compiler_params=pltpu.CompilerParams(
            dimension_semantics=("parallel",),
            vmem_limit_bytes=_VMEM_LIMIT_BYTES,
        ),
    )(x2d, w1f, b1f, w2f, b2f, alpha2d, bias2d)

    return out2d.reshape(orig_shape)


# --------------------------------------------------------------------------- #
# Pure-JAX references                                                          #
# --------------------------------------------------------------------------- #
def _ln_ref(x, alpha, bias, eps=1e-3):
    mean = jnp.mean(x, axis=-1, keepdims=True)
    var = jnp.var(x, axis=-1, keepdims=True, ddof=1)   # unbiased, like torch.var
    return alpha * (x - mean) / jnp.sqrt(var + eps) + bias


def _ffn_residual_ref(x, w1, b1, w2, b2, alpha, bias, eps=1e-3):
    hp = jax.lax.Precision.HIGHEST
    h = jnp.maximum(jnp.dot(x, w1, precision=hp) + b1, 0.0)
    y = jnp.dot(h, w2, precision=hp) + b2
    return _ln_ref(y + x, alpha, bias, eps)


if __name__ == "__main__":
    key = jax.random.PRNGKey(0)
    B, S, D_MODEL, D_FF = 2, 8, 32, 64
    k_x, k_w1, k_b1, k_w2, k_b2, k_a = jax.random.split(key, 6)

    x = jax.random.normal(k_x, (B, S, D_MODEL), dtype=jnp.float32)
    # FeedForward parameters (scaled ~ nn.Linear default fan-in scale).
    w1 = jax.random.normal(k_w1, (D_MODEL, D_FF), jnp.float32) / jnp.sqrt(D_MODEL)
    b1 = jax.random.normal(k_b1, (D_FF,), jnp.float32) * 0.1
    w2 = jax.random.normal(k_w2, (D_FF, D_MODEL), jnp.float32) / jnp.sqrt(D_FF)
    b2 = jax.random.normal(k_b2, (D_MODEL,), jnp.float32) * 0.1
    # LayerNormalization parameters (init matches nn.Parameter ones / zeros).
    alpha = jnp.ones((D_MODEL,), dtype=jnp.float32)
    bias = jnp.zeros((D_MODEL,), dtype=jnp.float32)

    # --- standalone LayerNormalization kernel --------------------------------
    out_ln = jax.block_until_ready(layer_normalization(x, alpha, bias, eps=1e-3))
    ref_ln = _ln_ref(x, alpha, bias, eps=1e-3)
    assert out_ln.shape == x.shape
    assert jnp.allclose(out_ln, ref_ln, atol=2e-5, rtol=2e-5), "LN mismatch"

    # Ragged row count: exercises the pad-free cdiv grid with a masked last tile.
    x_rag = jax.random.normal(jax.random.PRNGKey(1), (3, 13, D_MODEL), jnp.float32)
    a_rag = 1.0 + 0.1 * jax.random.normal(k_a, (D_MODEL,), jnp.float32)
    b_rag = 0.1 * jax.random.normal(k_a, (D_MODEL,), jnp.float32)
    out_rag = jax.block_until_ready(
        layer_normalization(x_rag, a_rag, b_rag, eps=1e-3))
    ref_rag = _ln_ref(x_rag, a_rag, b_rag, eps=1e-3)
    assert out_rag.shape == x_rag.shape
    assert jnp.allclose(out_rag, ref_rag, atol=2e-5, rtol=2e-5), "LN ragged mismatch"

    # --- fused FFN -> residual add -> LayerNorm (ResidualBlock #2) -----------
    out_ffn = jax.block_until_ready(
        ffn_residual_layernorm(x, w1, b1, w2, b2, alpha, bias, eps=1e-3))
    ref_ffn = _ffn_residual_ref(x, w1, b1, w2, b2, alpha, bias, eps=1e-3)
    assert out_ffn.shape == x.shape
    assert jnp.allclose(out_ffn, ref_ffn, atol=2e-3, rtol=2e-3), "FFN+LN mismatch"

    print("KERNEL_OK")
</pallas_src>

<mosaic_0001>
module attributes {stable_mosaic.version = 11 : i64} {
  func.func @_layernorm_kernel(%arg0: i32, %arg1: memref<8x32xf32, #tpu.memory_space<vmem>>, %arg2: memref<1x32xf32, #tpu.memory_space<vmem>>, %arg3: memref<1x32xf32, #tpu.memory_space<vmem>>, %arg4: memref<8x32xf32, #tpu.memory_space<vmem>>) attributes {dimension_semantics = [#tpu.dimension_semantics<parallel>], iteration_bounds = array<i64: 2>, scalar_prefetch = 0 : i64, scratch_operands = 0 : i64, tpu.core_type = #tpu.core_type<tc>, window_params = [{transform_indices = @transform_0, window_bounds = array<i64: 8, 32>}, {pipeline_mode = #tpu.pipeline_mode<synchronous>, transform_indices = @transform_1, window_bounds = array<i64: 1, 32>}, {pipeline_mode = #tpu.pipeline_mode<synchronous>, transform_indices = @transform_2, window_bounds = array<i64: 1, 32>}, {transform_indices = @transform_3, window_bounds = array<i64: 8, 32>}]} {
    %c0 = arith.constant 0 : index
    %c0_0 = arith.constant 0 : index
    %0 = vector.load %arg1[%c0, %c0_0] : memref<8x32xf32, #tpu.memory_space<vmem>>, vector<8x32xf32>
    %c0_1 = arith.constant 0 : index
    %c0_2 = arith.constant 0 : index
    %1 = vector.load %arg2[%c0_1, %c0_2] : memref<1x32xf32, #tpu.memory_space<vmem>>, vector<1x32xf32>
    %c0_3 = arith.constant 0 : index
    %c0_4 = arith.constant 0 : index
    %2 = vector.load %arg3[%c0_3, %c0_4] : memref<1x32xf32, #tpu.memory_space<vmem>>, vector<1x32xf32>
    %cst = arith.constant dense<0.000000e+00> : vector<8xf32>
    %3 = vector.multi_reduction <add>, %0, %cst [1] : vector<8x32xf32> to vector<8xf32>
    %4 = vector.shape_cast %3 : vector<8xf32> to vector<8x1xf32>
    %5 = arith.mulf %0, %0 : vector<8x32xf32>
    %cst_5 = arith.constant dense<0.000000e+00> : vector<8xf32>
    %6 = vector.multi_reduction <add>, %5, %cst_5 [1] : vector<8x32xf32> to vector<8xf32>
    %7 = vector.shape_cast %6 : vector<8xf32> to vector<8x1xf32>
    %cst_6 = arith.constant 3.200000e+01 : f32
    %8 = vector.broadcast %cst_6 : f32 to vector<8x1xf32>
    %9 = arith.divf %4, %8 : vector<8x1xf32>
    %cst_7 = arith.constant 3.200000e+01 : f32
    %10 = vector.broadcast %cst_7 : f32 to vector<8x1xf32>
    %11 = arith.mulf %10, %9 : vector<8x1xf32>
    %12 = arith.mulf %11, %9 : vector<8x1xf32>
    %13 = arith.subf %7, %12 : vector<8x1xf32>
    %cst_8 = arith.constant 3.100000e+01 : f32
    %14 = vector.broadcast %cst_8 : f32 to vector<8x1xf32>
    %15 = arith.divf %13, %14 : vector<8x1xf32>
    %cst_9 = arith.constant 1.000000e-03 : f32
    %16 = vector.broadcast %cst_9 : f32 to vector<8x1xf32>
    %17 = arith.addf %15, %16 : vector<8x1xf32>
    %18 = math.rsqrt %17 : vector<8x1xf32>
    %19 = vector.broadcast %9 : vector<8x1xf32> to vector<8x32xf32>
    %20 = arith.subf %0, %19 : vector<8x32xf32>
    %21 = vector.broadcast %18 : vector<8x1xf32> to vector<8x32xf32>
    %22 = arith.mulf %20, %21 : vector<8x32xf32>
    %23 = vector.broadcast %1 : vector<1x32xf32> to vector<8x32xf32>
    %24 = arith.mulf %22, %23 : vector<8x32xf32>
    %25 = vector.broadcast %2 : vector<1x32xf32> to vector<8x32xf32>
    %26 = arith.addf %24, %25 : vector<8x32xf32>
    %c0_10 = arith.constant 0 : index
    %c0_11 = arith.constant 0 : index
    %27 = vector.load %arg4[%c0_10, %c0_11] : memref<8x32xf32, #tpu.memory_space<vmem>>, vector<8x32xf32>
    tpu.vector_store %arg4[%c0_10, %c0_11], %26 {strides = array<i32>} : memref<8x32xf32, #tpu.memory_space<vmem>>, vector<8x32xf32>,
    return
  }
  func.func @transform_0(%arg0: i32) -> (i32, i32) {
    %c0_i32 = arith.constant 0 : i32
    %c0_i32_0 = arith.constant 0 : i32
    return %arg0, %c0_i32 : i32, i32
  }
  func.func @transform_1(%arg0: i32) -> (i32, i32) {
    %c0_i32 = arith.constant 0 : i32
    %c0_i32_0 = arith.constant 0 : i32
    %c0_i32_1 = arith.constant 0 : i32
    return %c0_i32, %c0_i32_0 : i32, i32
  }
  func.func @transform_2(%arg0: i32) -> (i32, i32) {
    %c0_i32 = arith.constant 0 : i32
    %c0_i32_0 = arith.constant 0 : i32
    %c0_i32_1 = arith.constant 0 : i32
    return %c0_i32, %c0_i32_0 : i32, i32
  }
  func.func @transform_3(%arg0: i32) -> (i32, i32) {
    %c0_i32 = arith.constant 0 : i32
    %c0_i32_0 = arith.constant 0 : i32
    return %arg0, %c0_i32 : i32, i32
  }
}

</mosaic_0001>

<bundles_post_ra>
// kernel: tpu_custom_call.1
= control target key start
LH: loop header
LB: loop body
LE: loop exit
PB: predicated region body
PF: predicated region fallthrough
CT: control target
= control target key end

     0   :  { %8 = vsyncpa [#allocation3], 0  ;;  %s635_s0 = inlined_call_operand.hbm [shape: f32[16,32], index: 0, kind: input, shape index: {}]   ;;  %s636_s1 = inlined_call_operand.vmem [shape: f32[1,32], index: 1, kind: input, shape index: {}]   ;;  %s637_s2 = inlined_call_operand.vmem [shape: f32[1,32], index: 2, kind: input, shape index: {}]   ;;  %s638_s3 = inlined_call_operand.hbm [shape: f32[16,32], index: 3, kind: output, shape index: {}]  }
   0x1   :  { %10 = vsyncpa [#allocation3 + $0x1], 0 }
   0x2   :  { %11 = vsyncpa [#allocation4], 0 }
   0x3   :  { %13 = vsyncpa [#allocation4 + $0x1], 0  ;;  %s485_s12 = smov 0   ;;  %s487_s13 = smov 0  }
   0x4   :  { %s489_s14 = smov 0   ;;  %s491_s15 = smov 0  }
   0x5 LB: > { %s506_s16 = sadd.s32 4294967295, %s461_s15   ;;  %s307_s17 = sadd.s32 4294967294, %s461_s15   ;;  %s461_s15 = sphi %s491_s15, %s655_s15   ;;  %s457_s14 = sphi %s489_s14, %s654_s14   ;;  %s453_s13 = sphi %s487_s13, %s653_s13   ;;  %s449_s12 = sphi %s485_s12, %s652_s12  }
   0x6   : > { %s510_s18 = sadd.s32 1, %s461_s15   ;;  %s26_s19 = sadd.s32 1, %s457_s14 }
   0x7   : > { %s23_s20 = ssub.s32 %s461_s15, %s510_s18  ;;  %p33_p0 = scmp.ne.s32.totalorder %s457_s14, %s453_s13 }
   0x8   : > { %p24_p1 = scmp.eq.s32.totalorder %s23_s20, 0  ;;  %p34_p2 = scmp.eq.s32.totalorder %s461_s15, 0 }
   0x9   : > { %p39_p3 = scmp.ne.s32.totalorder %s453_s13, %s449_s12  ;;  %p40_p4 = scmp.eq.s32.totalorder %s506_s16, 0 }
   0xa   : > { %s522_s21 = scalar_select %p24_p1, %s457_s14, %s26_s19  }
   0xb   : > { %p524_p5 = por %p34_p2, %p33_p0  ;;  %p528_p6 = por %p40_p4, %p39_p3 }
   0xc   : > { %p105_p7 = scmp.eq.s32.totalorder %s506_s16, 1  ;;  %p111_p8 = scmp.eq.s32.totalorder %s307_s17, 1 }
   0xd   : > { %s642_s23 = scalar_select %p528_p6, 1, 0 }
   0xe   : > { %p333_p10 = scmp.lt.s32.totalorder %s461_s15, 2  ;;  %p535_p11 = por %p105_p7, %p33_p0 }
   0xf   : > { %p539_p12 = por %p111_p8, %p39_p3  ;;  %s137_s26 = sand.u32 1, %s457_s14  }
  0x10   : > { %s643_s24 = scalar_select %p535_p11, 1, 0 }
  0x11   : > { %s644_s25 = scalar_select %p539_p12, 1, 0 }
  0x12   : > { %s311_s27 = sshll.u32 %s461_s15, 7  ;;  %s310_s28 = sshll.u32 %s137_s26, 3 }
  0x13   : > { %s548_s4 = scalar_lea.hbm %s635_s0, %s311_s27  ;;  %s141_s5 = scalar_lea.vmem [#allocation2], %s310_s28 }
  0x14   : > { %s148_s6 = sshll.u32 %s141_s5, 4  ;;  %p552_p13 = pnand %p333_p10, %p524_p5  ;;  %s556_s6 = int_to_ptr.vmem [resolvable:$true] %s148_s6 }
  0x15   : > { %s138_s8 = scalar_lea.sflag [#allocation3], %s137_s26  ;;  %s369_s9 = scalar_lea.hbm %s548_s4, 128 }
  0x16   : > { %p370_p2 = scmp.ne.s32.totalorder %s548_s4, %s369_s9  ;;  %p371_p3 = pneg %p552_p13 }
  0x17   : > { %s374_s17 = scalar_lea.hbm %s635_s0, 256  ;;  %p375_p5 = scmp.lt.s32.totalorder %s548_s4, %s635_s0 }
  0x18   : > { %p372_p4 = pnand %p371_p3, %p370_p2  ;;  %p376_p8 = scmp.lt.s32.totalorder %s374_s17, %s369_s9 }
  0x1a   : > { %p373_p7 = pneg %p372_p4  ;;  %p377_p10 = por %p376_p8, %p375_p5 }
  0x1c   : > { %p378_p9 = pnand %p377_p10, %p373_p7 }
  0x1e   : > { %381 = shalt.err (!%p378_p9)
}
  0x1f   : > { %s382_s22 = scalar_lea.vmem %s556_s6, 128  ;;  %s463_s26 = smov [#allocation2]  }
  0x20   : > { %p383_p0 = scmp.ne.s32.totalorder %s556_s6, %s382_s22  ;;  %s387_s27 = sshll.u32 %s463_s26, 4  ;;  %s388_s27 = int_to_ptr.vmem [resolvable:$false] %s387_s27 }
  0x21   : > { %s389_s28 = scalar_lea.vmem %s388_s27, 256  ;;  %p390_p4 = scmp.lt.s32.totalorder %s556_s6, %s388_s27 }
  0x22   : > { %p385_p1 = pnand %p383_p0, %p371_p3  ;;  %p391_p12 = scmp.lt.s32.totalorder %s389_s28, %s382_s22 }
  0x24   : > { %p386_p2 = pneg %p385_p1  ;;  %p392_p11 = por %p391_p12, %p390_p4 }
  0x26   : > { %p393_p6 = pnand %p392_p11, %p386_p2 }
  0x28   : > { %396 = shalt.err (!%p393_p6)
}
  0x29   : > { %328 = dma.hbm_to_vmem [thread:$0]  (!%p552_p13), %s548_s4, 128, %s556_s6, %s138_s8  }
  0x2a   : > { %p646_p9 = scmp.lt.s32.totalorder %s461_s15, 3  ;;  %p647_p7 = scmp.ge.s32.totalorder %s461_s15, 1 }
  0x2c   : > { %p154_p0 = pnand %p647_p7, %p646_p9 }
  0x2d   : > { %s583_s29 = sand.u32 (!%p154_p0), 1, %s453_s13   ;;  %p648_p6 = scmp.ne.s32.totalorder (!%p154_p0), %s642_s23, 0 }
  0x2e   : > { %157 = sbr.rel (%p154_p0) target bundleno = 237 (0xed), region = 32  ;;  %s313_s30 = sshll.u32 (!%p154_p0), %s583_s29, 3 }
  0x2f   : > { %s160_s5 = scalar_lea.sflag (!%p154_p0), [#allocation3], %s583_s29  ;;  %s163_s9 = scalar_lea.vmem (!%p154_p0), [#allocation2], %s313_s30 }
  0x33   : > { %440 = dma.done.wait (%p648_p6), %s160_s5, 128  }
  0x34   : > { %442 = vsyncadd (%p648_p6), %s160_s5, 4294967168  ;;  %vm189_vm0 = vcmask 261120   ;;  %v186_v0 = vld [vmem:[%s163_s9] sm:$0xff]  ;;  %s318_s8 = sshll.u32 %s506_s16, 7  ;;  %s185_s10 = scalar_lea.vmem [#allocation5], %s313_s30 }
  0x35   : > { %v190_v1 = vsel %vm189_vm0, %v186_v0, 0.0  ;;  %v193_v2 = vmul.f32 %v186_v0, %v186_v0  ;;  %v315_v14 = vld [vmem:[%s636_s1] ss:$0 sm:$0xff]  ;;  %s237_s11 = sshll.u32 %s185_s10, 4  ;;  %s235_s20 = scalar_lea.hbm %s638_s3, %s318_s8  ;;  %s238_s11 = int_to_ptr.vmem [resolvable:$true] %s237_s11 }
  0x36   : > { %191 = vadd.xlane.f32.xlu0 %v190_v1  ;;  %v316_v16 = vld [vmem:[%s637_s2] ss:$0 sm:$0xff]  ;;  %s224_s22 = scalar_lea.sflag [#allocation4], %s583_s29  ;;  %s397_s26 = scalar_lea.vmem %s238_s11, 128 }
  0x37   : > { %v194_v3 = vsel %vm189_vm0, %v193_v2, 0.0  ;;  %p398_p11 = scmp.ne.s32.totalorder %s238_s11, %s397_s26  ;;  %p649_p12 = scmp.ne.s32.totalorder %s643_s24, 0 }
  0x38   : > { %s464_s27 = smov [#allocation5]  }
  0x39   : > { %p399_p13 = pnand %p398_p11, %p649_p12  ;;  %s401_s28 = sshll.u32 %s464_s27, 4  ;;  %s402_s28 = int_to_ptr.vmem [resolvable:$false] %s401_s28 }
  0x3a   : > { %195 = vadd.xlane.f32.xlu0 %v194_v3  ;;  %s403_s16 = scalar_lea.vmem %s402_s28, 256  ;;  %p404_p3 = scmp.lt.s32.totalorder %s238_s11, %s402_s28 }
  0x3b   : > { %p400_p1 = pneg %p399_p13  ;;  %p405_p5 = scmp.lt.s32.totalorder %s403_s16, %s397_s26 }
  0x3d   : > { %p406_p8 = por %p405_p5, %p404_p3 }
  0x3f   : > { %p407_p10 = pnand %p406_p8, %p400_p1 }
  0xbf   : > { %v192_v4 = vpop.xlane.xlu0 %191 }
  0xc0   : > { %v198_v5 = vmul.f32 0.03125, %v192_v4 }
  0xc2   : > { %v199_v6 = vmul.f32 32.0, %v198_v5  ;;  %v206_v12 = vsub.f32 %v186_v0, %v198_v5 }
  0xc3   : > { %v196_v7 = vpop.xlane.xlu0 %195 }
  0xc4   : > { %v200_v8 = vmul.f32 %v199_v6, %v198_v5 }
  0xc6   : > { %v201_v9 = vsub.f32 %v196_v7, %v200_v8 }
  0xc8   : > { %v203_v10 = vmul.f32 0.032258064, %v201_v9 }
  0xca   : > { %v204_v11 = vadd.f32 0.001, %v203_v10 }
  0xcc   : > { %367 = vrsqrt.f32 %v204_v11 }
  0xd9   : > { %v368_v13 = vpop.eup %367 }
  0xda   : > { %v207_v15 = vmul.f32 %v368_v13, %v206_v12 }
  0xdc   : > { %v214_v17 = vmul.f32 %v315_v14, %v207_v15 }
  0xde   : > { %v221_v18 = vadd.f32 %v316_v16, %v214_v17 }
  0xe0   : > { %222 = vst.msk [vmem:[%s185_s10] sm:$0xff] %vm189_vm0, %v221_v18 }
  0xe1   : > { %410 = shalt.err (!%p407_p10)
}
  0xe2   : > { %s411_s30 = scalar_lea.hbm %s235_s20, 128  ;;  %s415_s9 = scalar_lea.hbm %s638_s3, 256 }
  0xe3   : > { %p412_p2 = scmp.ne.s32.totalorder %s235_s20, %s411_s30  ;;  %p416_p7 = scmp.lt.s32.totalorder %s235_s20, %s638_s3 }
  0xe4   : > { %p417_p0 = scmp.lt.s32.totalorder %s415_s9, %s411_s30 }
  0xe5   : > { %p413_p4 = pnand %p412_p2, %p649_p12 }
  0xe6   : > { %p418_p6 = por %p417_p0, %p416_p7 }
  0xe7   : > { %p414_p9 = pneg %p413_p4 }
  0xe9   : > { %p419_p11 = pnand %p418_p6, %p414_p9 }
  0xeb   : > { %422 = shalt.err (!%p419_p11)
}
  0xec   : > { %323 = dma.vmem_to_hbm [thread:$0]  (%p649_p12), %s238_s11, 128, %s235_s20, %s224_s22  }
  0xed PF: > { %s249_s6 = sand.u32 1, %s449_s12   ;;  %p650_p13 = scmp.ne.s32.totalorder %s644_s25, 0 }
  0xee   : > { %p651_p1 = scmp.ge.s32.totalorder %s461_s15, 2  ;;  %s250_s7 = scalar_lea.sflag [#allocation4], %s249_s6 }
  0xf0   : > { %p330_p3 = pnand %p651_p1, %p650_p13 }
  0xf2   : > { %p331_p5 = pneg %p330_p3 }
  0xf4   : > { %444 = dma.done.wait (%p331_p5), %s250_s7, 128  }
  0xf5   : > { %446 = vsyncadd (%p331_p5), %s250_s7, 4294967168  ;;  %p16_p8 = scmp.ge.s32.totalorder %s510_s18, 4   ;;  %s652_s12 = smov %s453_s13 }
  0xf6   : > { %s653_s13 = smov %s457_s14  ;;  %s654_s14 = smov %s522_s21 }
  0xf7   : > { %s655_s15 = smov %s510_s18  ;;  %18 = sbr.rel (!%p16_p8) target bundleno = 5 (0x5), region = 77 }
  0xfc   :  { %255 = vsyncpa [#allocation3], 1 }
  0xfd   :  { %257 = vsyncpa [#allocation3 + $0x1], 1 }
  0xfe   :  { %258 = vsyncpa [#allocation4], 1 }
  0xff   :  { %260 = vsyncpa [#allocation4 + $0x1], 1 }

</bundles_post_ra>
